<compile_context>
chip_gen: v6e
topology: v6e:2x2x1
jax: 0.10.0
libtpu: 0.0.40
codegen_flags: <defaults>
</compile_context>

<pallas_src>
import functools

import jax
import jax.numpy as jnp
from jax import lax
from jax.experimental import pallas as pl
from jax.experimental.pallas import tpu as pltpu

LOG_STD_MAX = 2.0
LOG_STD_MIN = -5.0

HIDDEN = 256
MATMUL_DTYPE = jnp.bfloat16   # MXU operand dtype; accumulation stays f32


def actor_kernel(split, x_ref, w1_ref, b1_ref, w2_ref, b2_ref, wh_ref, bh_ref, out_ref):
    # fc1 + ReLU  (x already bf16; f32 accumulate; f32 elementwise)
    h1 = jnp.dot(x_ref[...], w1_ref[...], preferred_element_type=jnp.float32) + b1_ref[...]
    h1 = jnp.maximum(h1, 0.0)

    # fc2 + ReLU
    h2 = jnp.dot(h1.astype(MATMUL_DTYPE), w2_ref[...],
                 preferred_element_type=jnp.float32) + b2_ref[...]
    h2 = jnp.maximum(h2, 0.0)

    # packed heads: lanes [0:split) = mean head, lanes [split:...) = log_std head
    heads = jnp.dot(h2.astype(MATMUL_DTYPE), wh_ref[...],
                    preferred_element_type=jnp.float32) + bh_ref[...]

    log_std = jnp.tanh(heads)
    log_std = LOG_STD_MIN + 0.5 * (LOG_STD_MAX - LOG_STD_MIN) * (log_std + 1.0)

    lane = lax.broadcasted_iota(jnp.int32, heads.shape, 1)
    # single lane-dense, full-slab store
    out_ref[...] = jnp.where(lane >= split, log_std, heads)


def prepare_params(p, matmul_dtype=MATMUL_DTYPE):
    """One-time (out of the hot path): pack/fuse the two heads into one lane slab,
    pad to 128-lane multiples, reshape biases to (1, N), cast MXU weights to bf16."""
    act_dim = int(p["wm"].shape[1])

    if 2 * act_dim <= 128:
        split, head_w = act_dim, 128                      # both heads in one 128-lane slab
    else:
        split = ((act_dim + 127) // 128) * 128            # each head padded to 128-lane multiple
        head_w = 2 * split

    wh = jnp.zeros((HIDDEN, head_w), jnp.float32)
    wh = wh.at[:, :act_dim].set(p["wm"])
    wh = wh.at[:, split:split + act_dim].set(p["ws"])

    bh = jnp.zeros((1, head_w), jnp.float32)
    bh = bh.at[0, :act_dim].set(p["bm"])
    bh = bh.at[0, split:split + act_dim].set(p["bs"])

    kp = dict(
        w1=p["w1"].astype(matmul_dtype),
        b1=p["b1"].reshape(1, HIDDEN).astype(jnp.float32),
        w2=p["w2"].astype(matmul_dtype),
        b2=p["b2"].reshape(1, HIDDEN).astype(jnp.float32),
        wh=wh.astype(matmul_dtype),
        bh=bh,
    )
    meta = dict(act_dim=act_dim, split=split, head_w=head_w)
    return kp, meta


def _choose_tile_b(B):
    if B >= 256:
        return 256
    return max(16, ((B + 15) // 16) * 16)   # multiple of 16 (bf16 sublane packing)


@functools.partial(jax.jit, static_argnames=("split", "head_w"))
def actor_forward_slab(x, kp, *, split, head_w):
    """x: (B, obs_dim) float32.  Returns the packed (B, head_w) f32 head slab."""
    B, obs_dim = x.shape
    tile_b = _choose_tile_b(B)
    bp = pl.cdiv(B, tile_b) * tile_b

    xb = x.astype(MATMUL_DTYPE)              # cast once outside the kernel
    if bp != B:
        xb = jnp.pad(xb, ((0, bp - B), (0, 0)))

    slab = pl.pallas_call(
        functools.partial(actor_kernel, split),
        out_shape=jax.ShapeDtypeStruct((bp, head_w), jnp.float32),
        grid=(bp // tile_b,),
        in_specs=[
            pl.BlockSpec((tile_b, obs_dim), lambda i: (i, 0)),   # x tile (streamed)
            pl.BlockSpec((obs_dim, HIDDEN), lambda i: (0, 0)),   # w1 (resident)
            pl.BlockSpec((1, HIDDEN), lambda i: (0, 0)),         # b1
            pl.BlockSpec((HIDDEN, HIDDEN), lambda i: (0, 0)),    # w2
            pl.BlockSpec((1, HIDDEN), lambda i: (0, 0)),         # b2
            pl.BlockSpec((HIDDEN, head_w), lambda i: (0, 0)),    # packed heads W
            pl.BlockSpec((1, head_w), lambda i: (0, 0)),         # packed heads b
        ],
        out_specs=pl.BlockSpec((tile_b, head_w), lambda i: (i, 0)),
        compiler_params=pltpu.CompilerParams(dimension_semantics=("parallel",)),
    )(xb, kp["w1"], kp["b1"], kp["w2"], kp["b2"], kp["wh"], kp["bh"])

    return slab[:B] if bp != B else slab


def split_heads(slab, act_dim, split):
    """Lazy view of (mean, log_std) from the packed slab, at the point of use."""
    return slab[:, :act_dim], slab[:, split:split + act_dim]


def init_params(key, obs_dim, act_dim):
    """Deterministic init mimicking nn.Linear's U(-1/sqrt(fan_in), 1/sqrt(fan_in)).
    Weights stored as (in_features, out_features) so each layer is y = x @ W + b."""
    ks = jax.random.split(key, 8)

    def lin(kw, kb, fan_in, fan_out):
        bound = 1.0 / jnp.sqrt(float(fan_in))
        w = jax.random.uniform(kw, (fan_in, fan_out), jnp.float32, -bound, bound)
        b = jax.random.uniform(kb, (fan_out,), jnp.float32, -bound, bound)
        return w, b

    w1, b1 = lin(ks[0], ks[1], obs_dim, HIDDEN)
    w2, b2 = lin(ks[2], ks[3], HIDDEN, HIDDEN)
    wm, bm = lin(ks[4], ks[5], HIDDEN, act_dim)
    ws, bs = lin(ks[6], ks[7], HIDDEN, act_dim)
    return dict(w1=w1, b1=b1, w2=w2, b2=b2, wm=wm, bm=bm, ws=ws, bs=bs)


def actor_forward_ref(x, p, matmul_dtype=jnp.float32):
    """Pure-JAX reference.  matmul_dtype mirrors the kernel's MXU precision policy."""
    def mm(a, w):
        return jnp.dot(a.astype(matmul_dtype), w.astype(matmul_dtype),
                       preferred_element_type=jnp.float32)

    h1 = jnp.maximum(mm(x, p["w1"]) + p["b1"], 0.0)
    h2 = jnp.maximum(mm(h1, p["w2"]) + p["b2"], 0.0)
    mean = mm(h2, p["wm"]) + p["bm"]
    log_std = jnp.tanh(mm(h2, p["ws"]) + p["bs"])
    log_std = LOG_STD_MIN + 0.5 * (LOG_STD_MAX - LOG_STD_MIN) * (log_std + 1.0)
    return mean, log_std


def _check(x, params, kp, meta):
    slab = actor_forward_slab(x, kp, split=meta["split"], head_w=meta["head_w"])
    jax.block_until_ready(slab)
    mean, log_std = split_heads(slab, meta["act_dim"], meta["split"])

    # Tight check against a reference with the same precision policy (bf16 MXU operands,
    # f32 accumulation / elementwise).
    mean_q, log_std_q = actor_forward_ref(x, params, matmul_dtype=MATMUL_DTYPE)
    assert jnp.allclose(mean, mean_q, atol=2e-4, rtol=2e-4)
    assert jnp.allclose(log_std, log_std_q, atol=2e-4, rtol=2e-4)

    # Loose sanity check against the pure-f32 semantics of the PyTorch module
    # (difference is only the bf16 weight/activation quantization).
    mean_f, log_std_f = actor_forward_ref(x, params, matmul_dtype=jnp.float32)
    assert jnp.allclose(mean, mean_f, atol=5e-2, rtol=5e-2)
    assert jnp.allclose(log_std, log_std_f, atol=5e-2, rtol=5e-2)


if __name__ == "__main__":
    key = jax.random.PRNGKey(0)
    k_x, k_x2, k_p = jax.random.split(key, 3)

    OBS_DIM, ACT_DIM = 8, 4  # e.g. a small continuous-control env
    params = init_params(k_p, OBS_DIM, ACT_DIM)
    kernel_params, meta = prepare_params(params)   # one-time, outside the hot path

    # Tiny inference batch (launch/DMA-latency bound; padded to one 16-row tile).
    x_small = jax.random.normal(k_x, (2, OBS_DIM), jnp.float32)
    _check(x_small, params, kernel_params, meta)

    # Rollout-sized batch exercising the multi-step grid + tail padding path.
    x_big = jax.random.normal(k_x2, (384, OBS_DIM), jnp.float32)
    _check(x_big, params, kernel_params, meta)

    print("KERNEL_OK")
</pallas_src>

<mosaic_0001>
module attributes {stable_mosaic.version = 11 : i64} {
  func.func @actor_kernel(%arg0: i32, %arg1: memref<16x8xbf16, #tpu.memory_space<vmem>>, %arg2: memref<8x256xbf16, #tpu.memory_space<vmem>>, %arg3: memref<1x256xf32, #tpu.memory_space<vmem>>, %arg4: memref<256x256xbf16, #tpu.memory_space<vmem>>, %arg5: memref<1x256xf32, #tpu.memory_space<vmem>>, %arg6: memref<256x128xbf16, #tpu.memory_space<vmem>>, %arg7: memref<1x128xf32, #tpu.memory_space<vmem>>, %arg8: memref<16x128xf32, #tpu.memory_space<vmem>>) attributes {dimension_semantics = [#tpu.dimension_semantics<parallel>], iteration_bounds = array<i64: 1>, scalar_prefetch = 0 : i64, scratch_operands = 0 : i64, tpu.core_type = #tpu.core_type<tc>, window_params = [{transform_indices = @transform_0, window_bounds = array<i64: 16, 8>}, {pipeline_mode = #tpu.pipeline_mode<synchronous>, transform_indices = @transform_1, window_bounds = array<i64: 8, 256>}, {pipeline_mode = #tpu.pipeline_mode<synchronous>, transform_indices = @transform_2, window_bounds = array<i64: 1, 256>}, {pipeline_mode = #tpu.pipeline_mode<synchronous>, transform_indices = @transform_3, window_bounds = array<i64: 256, 256>}, {pipeline_mode = #tpu.pipeline_mode<synchronous>, transform_indices = @transform_4, window_bounds = array<i64: 1, 256>}, {pipeline_mode = #tpu.pipeline_mode<synchronous>, transform_indices = @transform_5, window_bounds = array<i64: 256, 128>}, {pipeline_mode = #tpu.pipeline_mode<synchronous>, transform_indices = @transform_6, window_bounds = array<i64: 1, 128>}, {transform_indices = @transform_7, window_bounds = array<i64: 16, 128>}]} {
    %c0 = arith.constant 0 : index
    %c0_0 = arith.constant 0 : index
    %0 = vector.load %arg1[%c0, %c0_0] : memref<16x8xbf16, #tpu.memory_space<vmem>>, vector<16x8xbf16>
    %c0_1 = arith.constant 0 : index
    %c0_2 = arith.constant 0 : index
    %1 = vector.load %arg2[%c0_1, %c0_2] : memref<8x256xbf16, #tpu.memory_space<vmem>>, vector<8x256xbf16>
    %cst = arith.constant dense<0.000000e+00> : vector<16x256xf32>
    %2 = tpu.matmul %0, %1, %cst {dimension_numbers = #tpu.dot_dimension_numbers<[1], [0], [0], [1], [0, 0, 1, 1], [], []>} : vector<16x8xbf16>, vector<8x256xbf16>, vector<16x256xf32> -> vector<16x256xf32>
    %c0_3 = arith.constant 0 : index
    %c0_4 = arith.constant 0 : index
    %3 = vector.load %arg3[%c0_3, %c0_4] : memref<1x256xf32, #tpu.memory_space<vmem>>, vector<1x256xf32>
    %4 = vector.broadcast %3 : vector<1x256xf32> to vector<16x256xf32>
    %5 = arith.addf %2, %4 : vector<16x256xf32>
    %cst_5 = arith.constant 0.000000e+00 : f32
    %6 = vector.broadcast %cst_5 : f32 to vector<16x256xf32>
    %7 = arith.maximumf %5, %6 : vector<16x256xf32>
    %8 = arith.truncf %7 : vector<16x256xf32> to vector<16x256xbf16>
    %c0_6 = arith.constant 0 : index
    %c0_7 = arith.constant 0 : index
    %9 = vector.load %arg4[%c0_6, %c0_7] : memref<256x256xbf16, #tpu.memory_space<vmem>>, vector<256x256xbf16>
    %cst_8 = arith.constant dense<0.000000e+00> : vector<16x256xf32>
    %10 = tpu.matmul %8, %9, %cst_8 {dimension_numbers = #tpu.dot_dimension_numbers<[1], [0], [0], [1], [0, 0, 1, 1], [], []>} : vector<16x256xbf16>, vector<256x256xbf16>, vector<16x256xf32> -> vector<16x256xf32>
    %c0_9 = arith.constant 0 : index
    %c0_10 = arith.constant 0 : index
    %11 = vector.load %arg5[%c0_9, %c0_10] : memref<1x256xf32, #tpu.memory_space<vmem>>, vector<1x256xf32>
    %12 = vector.broadcast %11 : vector<1x256xf32> to vector<16x256xf32>
    %13 = arith.addf %10, %12 : vector<16x256xf32>
    %cst_11 = arith.constant 0.000000e+00 : f32
    %14 = vector.broadcast %cst_11 : f32 to vector<16x256xf32>
    %15 = arith.maximumf %13, %14 : vector<16x256xf32>
    %16 = arith.truncf %15 : vector<16x256xf32> to vector<16x256xbf16>
    %c0_12 = arith.constant 0 : index
    %c0_13 = arith.constant 0 : index
    %17 = vector.load %arg6[%c0_12, %c0_13] : memref<256x128xbf16, #tpu.memory_space<vmem>>, vector<256x128xbf16>
    %cst_14 = arith.constant dense<0.000000e+00> : vector<16x128xf32>
    %18 = tpu.matmul %16, %17, %cst_14 {dimension_numbers = #tpu.dot_dimension_numbers<[1], [0], [0], [1], [0, 0, 1, 1], [], []>} : vector<16x256xbf16>, vector<256x128xbf16>, vector<16x128xf32> -> vector<16x128xf32>
    %c0_15 = arith.constant 0 : index
    %c0_16 = arith.constant 0 : index
    %19 = vector.load %arg7[%c0_15, %c0_16] : memref<1x128xf32, #tpu.memory_space<vmem>>, vector<1x128xf32>
    %20 = vector.broadcast %19 : vector<1x128xf32> to vector<16x128xf32>
    %21 = arith.addf %18, %20 : vector<16x128xf32>
    %22 = math.tanh %21 : vector<16x128xf32>
    %cst_17 = arith.constant 1.000000e+00 : f32
    %23 = vector.broadcast %cst_17 : f32 to vector<16x128xf32>
    %24 = arith.addf %22, %23 : vector<16x128xf32>
    %cst_18 = arith.constant 3.500000e+00 : f32
    %25 = vector.broadcast %cst_18 : f32 to vector<16x128xf32>
    %26 = arith.mulf %25, %24 : vector<16x128xf32>
    %cst_19 = arith.constant -5.000000e+00 : f32
    %27 = vector.broadcast %cst_19 : f32 to vector<16x128xf32>
    %28 = arith.addf %27, %26 : vector<16x128xf32>
    %29 = tpu.iota {dimensions = array<i32: 1>} : vector<16x128xi32>
    %c4_i32 = arith.constant 4 : i32
    %30 = vector.broadcast %c4_i32 : i32 to vector<16x128xi32>
    %31 = arith.cmpi sge, %29, %30 : vector<16x128xi32>
    %32 = arith.select %31, %28, %21 : vector<16x128xi1>, vector<16x128xf32>
    %c0_20 = arith.constant 0 : index
    %c0_21 = arith.constant 0 : index
    %33 = vector.load %arg8[%c0_20, %c0_21] : memref<16x128xf32, #tpu.memory_space<vmem>>, vector<16x128xf32>
    tpu.vector_store %arg8[%c0_20, %c0_21], %32 {strides = array<i32>} : memref<16x128xf32, #tpu.memory_space<vmem>>, vector<16x128xf32>,
    return
  }
  func.func @transform_0(%arg0: i32) -> (i32, i32) {
    %c0_i32 = arith.constant 0 : i32
    %c0_i32_0 = arith.constant 0 : i32
    return %arg0, %c0_i32 : i32, i32
  }
  func.func @transform_1(%arg0: i32) -> (i32, i32) {
    %c0_i32 = arith.constant 0 : i32
    %c0_i32_0 = arith.constant 0 : i32
    %c0_i32_1 = arith.constant 0 : i32
    return %c0_i32, %c0_i32_0 : i32, i32
  }
  func.func @transform_2(%arg0: i32) -> (i32, i32) {
    %c0_i32 = arith.constant 0 : i32
    %c0_i32_0 = arith.constant 0 : i32
    %c0_i32_1 = arith.constant 0 : i32
    return %c0_i32, %c0_i32_0 : i32, i32
  }
  func.func @transform_3(%arg0: i32) -> (i32, i32) {
    %c0_i32 = arith.constant 0 : i32
    %c0_i32_0 = arith.constant 0 : i32
    %c0_i32_1 = arith.constant 0 : i32
    return %c0_i32, %c0_i32_0 : i32, i32
  }
  func.func @transform_4(%arg0: i32) -> (i32, i32) {
    %c0_i32 = arith.constant 0 : i32
    %c0_i32_0 = arith.constant 0 : i32
    %c0_i32_1 = arith.constant 0 : i32
    return %c0_i32, %c0_i32_0 : i32, i32
  }
  func.func @transform_5(%arg0: i32) -> (i32, i32) {
    %c0_i32 = arith.constant 0 : i32
    %c0_i32_0 = arith.constant 0 : i32
    %c0_i32_1 = arith.constant 0 : i32
    return %c0_i32, %c0_i32_0 : i32, i32
  }
  func.func @transform_6(%arg0: i32) -> (i32, i32) {
    %c0_i32 = arith.constant 0 : i32
    %c0_i32_0 = arith.constant 0 : i32
    %c0_i32_1 = arith.constant 0 : i32
    return %c0_i32, %c0_i32_0 : i32, i32
  }
  func.func @transform_7(%arg0: i32) -> (i32, i32) {
    %c0_i32 = arith.constant 0 : i32
    %c0_i32_0 = arith.constant 0 : i32
    return %arg0, %c0_i32 : i32, i32
  }
}

</mosaic_0001>

<bundles_post_ra>
// kernel: actor_forward_slab.1
= control target key start
LH: loop header
LB: loop body
LE: loop exit
PB: predicated region body
PF: predicated region fallthrough
CT: control target
= control target key end

     0   :  { %12 = vsyncpa [#allocation3], 0  ;;  %s864_s0 = inlined_call_operand.vmem [shape: bf16[16,8], index: 0, kind: input, shape index: {}]   ;;  %s865_s1 = inlined_call_operand.vmem [shape: bf16[8,256], index: 1, kind: input, shape index: {}]   ;;  %s866_s2 = inlined_call_operand.vmem [shape: f32[1,256], index: 2, kind: input, shape index: {}]   ;;  %s867_s3 = inlined_call_operand.hbm [shape: bf16[256,256], index: 3, kind: input, shape index: {}]   ;;  %s868_s4 = inlined_call_operand.vmem [shape: f32[1,256], index: 4, kind: input, shape index: {}]   ;;  %s869_s5 = inlined_call_operand.hbm [shape: bf16[256,128], index: 5, kind: input, shape index: {}]   ;;  %s870_s6 = inlined_call_operand.vmem [shape: f32[1,128], index: 6, kind: input, shape index: {}]   ;;  %s871_s7 = inlined_call_operand.vmem [shape: f32[16,128], index: 7, kind: output, shape index: {}]  }
   0x1   :  { %13 = vsyncpa [#allocation5], 0  ;;  %s788_s24 = smov [#allocation2]  }
   0x2   :  { %s25_s25 = sshll.u32 %s788_s24, 4  ;;  %s26_s25 = int_to_ptr.vmem [resolvable:$true] %s25_s25 }
   0x3   :  { %s752_s26 = scalar_lea.vmem %s26_s25, 4096  ;;  %p757_p1 = scmp.lt.s32.totalorder %s26_s25, %s26_s25 }
   0x4   :  { %p753_p0 = scmp.ne.s32.totalorder %s26_s25, %s752_s26  ;;  %p758_p2 = scmp.lt.s32.totalorder %s752_s26, %s752_s26 }
   0x6   :  { %p759_p3 = por %p758_p2, %p757_p1 }
   0x8   :  { %p760_p4 = pnand %p759_p3, %p753_p0 }
   0xa   :  { %763 = shalt.err (!%p760_p4)
}
   0xb   :  { %s789_s27 = smov 128   ;;  %s790_s28 = smov 8  }
   0xc   :  { %31 = dma.hbm_to_vmem [thread:$0]  %s867_s3, 4096, %s26_s25, [#allocation3], %s789_s27, %s789_s27, %s790_s28  }
   0xd   :  { %s791_s8 = smov [#allocation4]  }
   0xe   :  { %s39_s9 = sshll.u32 %s791_s8, 4  ;;  %s40_s9 = int_to_ptr.vmem [resolvable:$true] %s39_s9 }
   0xf   :  { %s772_s10 = scalar_lea.vmem %s40_s9, 2048  ;;  %p777_p6 = scmp.lt.s32.totalorder %s40_s9, %s40_s9 }
  0x10   :  { %p773_p5 = scmp.ne.s32.totalorder %s40_s9, %s772_s10  ;;  %p778_p7 = scmp.lt.s32.totalorder %s772_s10, %s772_s10 }
  0x12   :  { %p779_p8 = por %p778_p7, %p777_p6 }
  0x14   :  { %p780_p9 = pnand %p779_p8, %p773_p5 }
  0x16   :  { %783 = shalt.err (!%p780_p9)
}
  0x17   :  { %s792_s11 = smov 64   ;;  %s793_s12 = smov 4  }
  0x18   :  { %45 = dma.hbm_to_vmem [thread:$0]  %s869_s5, 2048, %s40_s9, [#allocation5], %s792_s11, %s792_s11, %s793_s12  }
  0x19   :  { %784 = dma.done.wait [#allocation3], 4096  }
  0x1a   :  { %785 = vsyncadd [#allocation3], 4294963200 }
  0x1b   :  { %786 = dma.done.wait [#allocation5], 2048  }
  0x1c   :  { %787 = vsyncadd [#allocation5], 4294965248  ;;  %v794_v0 = vmov 0   ;;  %v57_v1 = vld [vmem:[%s865_s1] sm:$0xff]  ;;  %vm84_vm0 = vcmask 1043456   ;;  %vm80_vm1 = vcmask 64512   ;;  %v60_v48 = vlaneseq }
  0x1d   :  { %123 = vmatprep.mubr.bf16.mxu0 %v794_v0  ;;  %v592_v2 = vcombine.high %v57_v1, %v57_v1  ;;  %v591_v3 = vcombine.low %v57_v1, %v57_v1  ;;  %v676_v4 = vld [vmem:[#allocation2 + $0x74] ss:$8 sps:$4 sm:$0xff]   ;;  %v678_v5 = vld [vmem:[#allocation2 + $0x70] ss:$8 sps:$4 sm:$0xff]   ;;  %v675_v7 = vld [vmem:[%s864_s0] sm:$0xff]  }
  0x1e   :  { %v679_v8 = vld [vmem:[#allocation2 + $0x64] ss:$8 sps:$4 sm:$0xff]   ;;  %344 = vmatprep.subr.bf16.mxu1 %v676_v4  ;;  %v681_v9 = vld [vmem:[#allocation2 + $0x60] ss:$8 sps:$4 sm:$0xff]   ;;  %v682_v10 = vld [vmem:[#allocation2 + $0x54] ss:$8 sps:$4 sm:$0xff]  }
  0x1f   :  { %593 = vmatprep.subr.msk.bf16.mxu0 %vm84_vm0, %v592_v2  ;;  %v86_v6 = vsel %vm84_vm0, %v591_v3, 0  ;;  %345 = vmatpush1.bf16.msra.mxu1 %v678_v5  ;;  %v684_v11 = vld [vmem:[#allocation2 + $0x50] ss:$8 sps:$4 sm:$0xff]   ;;  %v685_v12 = vld [vmem:[#allocation2 + $0x44] ss:$8 sps:$4 sm:$0xff]   ;;  %v61_v49 = vshrl.u32 %v60_v48, 7 }
  0x20   :  { %106 = vmatpush1.bf16.msra.mxu0 %v86_v6  ;;  %346 = vmatprep.subr.bf16.mxu1 %v679_v8  ;;  %v687_v13 = vld [vmem:[#allocation2 + $0x40] ss:$8 sps:$4 sm:$0xff]   ;;  %v688_v14 = vld [vmem:[#allocation2 + $0x34] ss:$8 sps:$4 sm:$0xff]   ;;  %v690_v15 = vld [vmem:[#allocation2 + $0x30] ss:$8 sps:$4 sm:$0xff]  }
  0x21   :  { %v691_v16 = vld [vmem:[#allocation2 + $0x24] ss:$8 sps:$4 sm:$0xff]   ;;  %v693_v17 = vld [vmem:[#allocation2 + $0x20] ss:$8 sps:$4 sm:$0xff]   ;;  %v694_v18 = vld [vmem:[#allocation2 + $0x14] ss:$8 sps:$4 sm:$0xff]  }
  0x22   :  { %v696_v19 = vld [vmem:[#allocation2 + $0x10] ss:$8 sps:$4 sm:$0xff]   ;;  %v697_v20 = vld [vmem:[#allocation2 + $0x4] ss:$8 sps:$4 sm:$0xff]   ;;  %v699_v21 = vld [vmem:[#allocation2] ss:$8 sps:$4 sm:$0xff]  }
  0x23   :  { %594 = vmatmul.mubr.msk.bf16.vlgmr.msra.gmra.mxu0 %vm80_vm1, %v675_v7  ;;  %347 = vmatpush1.bf16.msra.mxu1 %v681_v9  ;;  %v700_v22 = vld [vmem:[#allocation2 + $0xf4] ss:$8 sps:$4 sm:$0xff]   ;;  %v702_v23 = vld [vmem:[#allocation2 + $0xf0] ss:$8 sps:$4 sm:$0xff]   ;;  %v703_v24 = vld [vmem:[#allocation2 + $0xe4] ss:$8 sps:$4 sm:$0xff]  }
  0x24   :  { %348 = vmatprep.subr.bf16.mxu1 %v682_v10  ;;  %v705_v25 = vld [vmem:[#allocation2 + $0xe0] ss:$8 sps:$4 sm:$0xff]   ;;  %v706_v26 = vld [vmem:[#allocation2 + $0xd4] ss:$8 sps:$4 sm:$0xff]   ;;  %v708_v27 = vld [vmem:[#allocation2 + $0xd0] ss:$8 sps:$4 sm:$0xff]  }
  0x25   :  { %v709_v28 = vld [vmem:[#allocation2 + $0xc4] ss:$8 sps:$4 sm:$0xff]   ;;  %v711_v29 = vld [vmem:[#allocation2 + $0xc0] ss:$8 sps:$4 sm:$0xff]   ;;  %v712_v30 = vld [vmem:[#allocation2 + $0xb4] ss:$8 sps:$4 sm:$0xff]  }
  0x26   :  { %v714_v31 = vld [vmem:[#allocation2 + $0xb0] ss:$8 sps:$4 sm:$0xff]   ;;  %v715_v32 = vld [vmem:[#allocation2 + $0xa4] ss:$8 sps:$4 sm:$0xff]   ;;  %v717_v33 = vld [vmem:[#allocation2 + $0xa0] ss:$8 sps:$4 sm:$0xff]  }
  0x27   :  { %349 = vmatpush1.bf16.msra.mxu1 %v684_v11  ;;  %v718_v34 = vld [vmem:[#allocation2 + $0x94] ss:$8 sps:$4 sm:$0xff]   ;;  %v720_v35 = vld [vmem:[#allocation2 + $0x90] ss:$8 sps:$4 sm:$0xff]   ;;  %v721_v36 = vld [vmem:[#allocation2 + $0x84] ss:$8 sps:$4 sm:$0xff]  }
  0x28   :  { %350 = vmatprep.subr.bf16.mxu1 %v685_v12  ;;  %v723_v37 = vld [vmem:[#allocation2 + $0x80] ss:$8 sps:$4 sm:$0xff]   ;;  %v724_v38 = vld [vmem:[#allocation4 + $0x78] sm:$0xff]   ;;  %v726_v40 = vld [vmem:[#allocation4 + $0x70] sm:$0xff]   ;;  %v66_v50 = vsub.s32 1, %v61_v49  ;;  %v62_v51 = vsub.s32 0, %v61_v49 }
  0x29   :  { %v725_v39 = vld [vmem:[#allocation4 + $0x38] sm:$0xff]   ;;  %644 = vmatprep.subr.bf16.mxu0 %v724_v38  ;;  %v727_v41 = vld [vmem:[#allocation4 + $0x30] sm:$0xff]   ;;  %v728_v42 = vld [vmem:[#allocation4 + $0x68] sm:$0xff]   ;;  %v578_v38 = vand.u32 127, %v60_v48 }
  0x2a   :  { %645 = vmatpush3.bf16.msra.mxu0 %v725_v39  ;;  %v729_v43 = vld [vmem:[#allocation4 + $0x28] sm:$0xff]   ;;  %v730_v44 = vld [vmem:[#allocation4 + $0x60] sm:$0xff]   ;;  %v732_v46 = vld [vmem:[#allocation4 + $0x58] sm:$0xff]  }
  0x2b   :  { %351 = vmatpush1.bf16.msra.mxu1 %v687_v13  ;;  %646 = vmatprep.subr.bf16.mxu0 %v726_v40  ;;  %v731_v45 = vld [vmem:[#allocation4 + $0x20] sm:$0xff]   ;;  %v733_v47 = vld [vmem:[#allocation4 + $0x18] sm:$0xff]   ;;  %v734_v5 = vld [vmem:[#allocation4 + $0x50] sm:$0xff]   ;;  %vm579_vm2 = vcmp.ge.s32.totalorder %v578_v38, 4 }
  0x2c   :  { %352 = vmatprep.subr.bf16.mxu1 %v688_v14  ;;  %v58_v52 = vld [vmem:[%s866_s2] sm:$0x3]  ;;  %v735_v6 = vld [vmem:[#allocation4 + $0x10] sm:$0xff]   ;;  %v736_v7 = vld [vmem:[#allocation4 + $0x48] sm:$0xff]  }
  0x2d   :  { %v67_v54 = vrot.slane %v58_v52, %v66_v50  ;;  %v63_v55 = vrot.slane %v58_v52, %v62_v51  ;;  %v737_v8 = vld [vmem:[#allocation4 + $0x8] sm:$0xff]   ;;  %v738_v9 = vld [vmem:[#allocation4 + $0x40] sm:$0xff]  }
  0x2e   :  { %647 = vmatpush3.bf16.msra.mxu0 %v727_v41  ;;  %v739_v10 = vld [vmem:[#allocation4] sm:$0xff]  }
  0x2f   :  { %353 = vmatpush1.bf16.msra.mxu1 %v690_v15  ;;  %648 = vmatprep.subr.bf16.mxu0 %v728_v42  ;;  %v172_v11 = vld [vmem:[%s868_s4] sm:$0x3] }
  0x30   :  { %354 = vmatprep.subr.bf16.mxu1 %v691_v16  ;;  %v181_v13 = vrot.slane %v172_v11, %v66_v50  ;;  %v177_v14 = vrot.slane %v172_v11, %v62_v51 }
  0x32   :  { %649 = vmatpush3.bf16.msra.mxu0 %v729_v43 }
  0x33   :  { %355 = vmatpush1.bf16.msra.mxu1 %v693_v17  ;;  %650 = vmatprep.subr.bf16.mxu0 %v730_v44 }
  0x34   :  { %356 = vmatprep.subr.bf16.mxu1 %v694_v18 }
  0x36   :  { %651 = vmatpush3.bf16.msra.mxu0 %v731_v45 }
  0x37   :  { %357 = vmatpush1.bf16.msra.mxu1 %v696_v19  ;;  %652 = vmatprep.subr.bf16.mxu0 %v732_v46 }
  0x38   :  { %358 = vmatprep.subr.bf16.mxu1 %v697_v20 }
  0x3a   :  { %653 = vmatpush3.bf16.msra.mxu0 %v733_v47 }
  0x3b   :  { %359 = vmatpush1.bf16.msra.mxu1 %v699_v21  ;;  %654 = vmatprep.subr.bf16.mxu0 %v734_v5 }
  0x3c   :  { %360 = vmatprep.subr.bf16.mxu1 %v700_v22 }
  0x3e   :  { %655 = vmatpush3.bf16.msra.mxu0 %v735_v6 }
  0x3f   :  { %361 = vmatpush2.bf16.msra.mxu1 %v702_v23  ;;  %656 = vmatprep.subr.bf16.mxu0 %v736_v7 }
  0x40   :  { %362 = vmatprep.subr.bf16.mxu1 %v703_v24 }
  0x42   :  { %657 = vmatpush3.bf16.msra.mxu0 %v737_v8 }
  0x43   :  { %363 = vmatpush2.bf16.msra.mxu1 %v705_v25  ;;  %658 = vmatprep.subr.bf16.mxu0 %v738_v9 }
  0x44   :  { %364 = vmatprep.subr.bf16.mxu1 %v706_v26 }
  0x46   :  { %659 = vmatpush3.bf16.msra.mxu0 %v739_v10 }
  0x47   :  { %365 = vmatpush2.bf16.msra.mxu1 %v708_v27 }
  0x48   :  { %366 = vmatprep.subr.bf16.mxu1 %v709_v28 }
  0x4b   :  { %367 = vmatpush2.bf16.msra.mxu1 %v711_v29  ;;  %v627_v29 = vld [vmem:[%s870_s6] ss:$0 sm:$0xff] }
  0x4c   :  { %368 = vmatprep.subr.bf16.mxu1 %v712_v30 }
  0x4f   :  { %369 = vmatpush2.bf16.msra.mxu1 %v714_v31 }
  0x50   :  { %370 = vmatprep.subr.bf16.mxu1 %v715_v32 }
  0x53   :  { %371 = vmatpush2.bf16.msra.mxu1 %v717_v33 }
  0x54   :  { %372 = vmatprep.subr.bf16.mxu1 %v718_v34 }
  0x57   :  { %373 = vmatpush2.bf16.msra.mxu1 %v720_v35 }
  0x58   :  { %374 = vmatprep.subr.bf16.mxu1 %v721_v36 }
  0x5b   :  { %375 = vmatpush2.bf16.msra.mxu1 %v723_v37 }
  0xe3   :  { %v125_v53 = vpop.f32.mrf.mxu0 }
  0xe4   :  { %v126_v60 = vadd.f32 %v125_v53, %v63_v55 }
  0xe5   :  { %v127_v56 = vpop.f32.mrf.mxu0 }
  0xe6   :  { %v128_v58 = vadd.f32 %v127_v56, %v67_v54  ;;  %v134_v2 = vmax.f32 %v126_v60, 0.0 }
  0xe7   :  { %v129_v57 = vpop.f32.mrf.mxu0 }
  0xe8   :  { %v130_v59 = vadd.f32 %v129_v57, %v63_v55  ;;  %v135_v0 = vmax.f32 %v128_v58, 0.0 }
  0xe9   :  { %v131_v61 = vpop.f32.mrf.mxu0 }
  0xea   :  { %v132_v62 = vadd.f32 %v131_v61, %v67_v54  ;;  %v136_v63 = vmax.f32 %v130_v59, 0.0 }
  0xec   :  { %v137_v1 = vmax.f32 %v132_v62, 0.0  ;;  %v138_v4 = vpack.c.bf16 %v136_v63, %v134_v2 }
  0xee   :  { %v139_v3 = vpack.c.bf16 %v137_v1, %v135_v0 }
  0xf0   :  { %376 = vmatprep.mubr.bf16.mxu1 %v139_v3 }
  0xf1   :  { %377 = vmatmul.mubr.bf16.vlgmr.msra.gmra.mxu1 %v138_v4 }
 0x1b1   :  { %v378_v12 = vpop.f32.mrf.mxu1 }
 0x1b2   :  { %v379_v19 = vadd.f32 %v378_v12, %v177_v14 }
 0x1b3   :  { %v380_v15 = vpop.f32.mrf.mxu1 }
 0x1b4   :  { %v381_v17 = vadd.f32 %v380_v15, %v181_v13  ;;  %v387_v25 = vmax.f32 %v379_v19, 0.0 }
 0x1b5   :  { %v382_v16 = vpop.f32.mrf.mxu1 }
 0x1b6   :  { %v383_v18 = vadd.f32 %v382_v16, %v177_v14  ;;  %v388_v23 = vmax.f32 %v381_v17, 0.0 }
 0x1b7   :  { %v384_v20 = vpop.f32.mrf.mxu1 }
 0x1b8   :  { %v385_v21 = vadd.f32 %v384_v20, %v181_v13  ;;  %v389_v22 = vmax.f32 %v383_v18, 0.0 }
 0x1ba   :  { %v390_v24 = vmax.f32 %v385_v21, 0.0  ;;  %v391_v27 = vpack.c.bf16 %v389_v22, %v387_v25 }
 0x1bc   :  { %v392_v26 = vpack.c.bf16 %v390_v24, %v388_v23 }
 0x1be   :  { %560 = vmatprep.mubr.bf16.mxu0 %v392_v26 }
 0x1bf   :  { %561 = vmatmul.mubr.bf16.vlgmr.msra.gmra.mxu0 %v391_v27 }
 0x27f   :  { %v660_v28 = vpop.f32.mrf.mxu0 }
 0x281   :  { %v661_v30 = vpop.f32.mrf.mxu0 }
 0x282   :  { %v662_v31 = vadd.f32 %v661_v30, %v660_v28 }
 0x283   :  { %v663_v32 = vpop.f32.mrf.mxu0 }
 0x284   :  { %v563_v33 = vadd.f32 %v662_v31, %v627_v29 }
 0x285   :  { %v664_v34 = vpop.f32.mrf.mxu0 }
 0x286   :  { %740 = vtanh.f32 %v563_v33  ;;  %v665_v35 = vadd.f32 %v664_v34, %v663_v32 }
 0x288   :  { %v566_v36 = vadd.f32 %v665_v35, %v627_v29 }
 0x28a   :  { %742 = vtanh.f32 %v566_v36 }
 0x293   :  { %v741_v37 = vpop.eup %740 }
 0x294   :  { %v571_v39 = vadd.f32 1.0, %v741_v37 }
 0x296   :  { %v573_v40 = vmul.f32 3.5, %v571_v39 }
 0x297   :  { %v743_v41 = vpop.eup %742 }
 0x298   :  { %v575_v42 = vadd.f32 -5.0, %v573_v40  ;;  %v572_v43 = vadd.f32 1.0, %v743_v41 }
 0x29a   :  { %v580_v44 = vsel %vm579_vm2, %v575_v42, %v563_v33  ;;  %v574_v45 = vmul.f32 3.5, %v572_v43 }
 0x29b   :  { %582 = vst [vmem:[%s871_s7] sm:$0xff] %v580_v44 }
 0x29c   :  { %v576_v46 = vadd.f32 -5.0, %v574_v45 }
 0x29e   :  { %v581_v47 = vsel %vm579_vm2, %v576_v46, %v566_v36 }
 0x29f   :  { %583 = vst [vmem:[%s871_s7 + $0x8] sm:$0xff] %v581_v47 }
 0x2a0   :  { %588 = vsyncpa [#allocation3], 1 }
 0x2a1   :  { %589 = vsyncpa [#allocation5], 1 }

</bundles_post_ra>
